<compile_context>
chip_gen: v6e
topology: v6e:2x2x1
jax: 0.10.0
libtpu: 0.0.40
codegen_flags: <defaults>
</compile_context>

<pallas_src>
import functools

import jax
import jax.numpy as jnp
from jax.experimental import pallas as pl
from jax.experimental.pallas import tpu as pltpu


def _cdiv(a, b):
    return -(-a // b)


def _round_up(x, m):
    return _cdiv(x, m) * m


def _s4norm_kernel(x_ref, w_ref, b_ref, o_ref, sum_ref, sq_ref, k_ref, *,
                   n_true, eps, col_tile, needs_col_mask):
    phase = pl.program_id(1)
    col = pl.program_id(2)

    @pl.when(jnp.logical_and(phase == 0, col == 0))
    def _init():
        # Per-row shift K (first element of the row).  Accumulating moments of
        # (x - K) keeps the variance formula well-conditioned when
        # |mean| >> std (review correctness concern #1).
        k_ref[...] = x_ref[:, 0:1].astype(jnp.float32)
        sum_ref[...] = jnp.zeros_like(sum_ref)
        sq_ref[...] = jnp.zeros_like(sq_ref)

    @pl.when(phase == 0)
    def _accumulate():
        x = x_ref[...].astype(jnp.float32)
        d = x - k_ref[...]
        if needs_col_mask:
            # Only emitted when N % col_tile != 0; masks the (garbage) lanes
            # of the ragged trailing column block so statistics use exactly
            # the N true elements.  Non-last blocks see an all-true mask.
            lane = jax.lax.broadcasted_iota(jnp.int32, d.shape, 1)
            rem = n_true - col * col_tile
            d = jnp.where(lane < rem, d, 0.0)
        sum_ref[...] += jnp.sum(d, axis=-1, keepdims=True)
        sq_ref[...] += jnp.sum(d * d, axis=-1, keepdims=True)

    @pl.when(jnp.logical_and(phase == 1, col == 0))
    def _finalize():
        # Fold the accumulated moments into per-row scale/shift once per row
        # block; every phase-1 column tile is then a pure mul + add.
        n_f = float(n_true)
        inv_n = 1.0 / n_f
        inv_nm1 = 1.0 / max(n_f - 1.0, 1.0)       # N == 1 guard
        s = sum_ref[...]
        q = sq_ref[...]
        mean = k_ref[...] + s * inv_n
        var = (q - s * s * inv_n) * inv_nm1       # shifted => well-conditioned
        std = jnp.sqrt(jnp.maximum(var, 0.0))
        scale = w_ref[...] / (std + eps)          # once per row block: exact div
        sum_ref[...] = scale                      # reuse scratch: per-row scale
        sq_ref[...] = b_ref[...] - mean * scale   # reuse scratch: per-row shift

    @pl.when(phase == 1)
    def _apply():
        x = x_ref[...].astype(jnp.float32)
        o_ref[...] = (x * sum_ref[...] + sq_ref[...]).astype(o_ref.dtype)


def s4norm_forward(feature_maps, weight, bias, *, eps=1e-8, max_block_cols=None):
    """feature_maps: (B, C, G, D, H, W); weight, bias: (C,) f32."""
    orig_shape = feature_maps.shape
    orig_dtype = feature_maps.dtype
    B, C = orig_shape[:2]
    n = 1
    for d in orig_shape[2:]:
        n *= int(d)
    rows = B * C

    x2 = feature_maps.reshape(rows, n)            # free layout-preserving view
    weight = weight.astype(jnp.float32)
    bias = bias.astype(jnp.float32)

    # Degenerate tiny shapes only: block dims must not exceed the array dims.
    rows_eff, n_eff = max(rows, 8), max(n, 128)
    if rows_eff != rows or n_eff != n:
        x2 = jnp.pad(x2, ((0, rows_eff - rows), (0, n_eff - n)))

    # ---- generation-aware VMEM budget (v5e/v6e 128 MiB, v7x 64 MiB) -------
    try:
        vmem_cap = int(pltpu.get_tpu_info().vmem_capacity_bytes)
    except Exception:  # no TPU info available — be conservative
        vmem_cap = 64 * 1024 * 1024
    vmem_budget = int(vmem_cap * 0.65)            # for 2 in + 2 out block buffers
    vmem_limit = int(vmem_cap * 0.85)             # scoped limit with headroom
    esize = x2.dtype.itemsize

    # ---- column tile: whole (128-aligned) row when the budget allows -------
    lane_max = (n_eff // 128) * 128               # largest 128-multiple <= n_eff
    tc_cap = lane_max
    if max_block_cols is not None:
        tc_cap = min(tc_cap, max(128, (int(max_block_cols) // 128) * 128))
    tc_budget = max(128, (vmem_budget // (4 * 8 * esize)) // 128 * 128)
    tc = min(tc_cap, tc_budget)
    n_col_blocks = _cdiv(n_eff, tc)
    needs_col_mask = (n % tc) != 0

    # ---- row tile: as large as the VMEM budget allows (amortize grid-step
    # overhead), but keep >= 2 balanced row blocks when possible so both v7x
    # TensorCores are fed.  (rows <= 8: single block — cross-core column
    # splitting with a combine step is not implemented.)
    sub_max = (rows_eff // 8) * 8                 # largest 8-multiple <= rows_eff
    rt_budget = max(8, (vmem_budget // (4 * tc * esize)) // 8 * 8)
    rt = min(sub_max, rt_budget)
    n_row_blocks = _cdiv(rows_eff, rt)
    if n_row_blocks == 1 and rows_eff >= 16:
        n_row_blocks = 2
    rt = min(sub_max, _round_up(_cdiv(rows_eff, n_row_blocks), 8))
    n_row_blocks = _cdiv(rows_eff, rt)

    # ---- per-row weight / bias columns (tiny: B*C elements) ----------------
    w_row = jnp.tile(weight, B)
    b_row = jnp.tile(bias, B)
    if rows_eff != rows:
        w_row = jnp.pad(w_row, (0, rows_eff - rows))
        b_row = jnp.pad(b_row, (0, rows_eff - rows))
    w_row = w_row.reshape(rows_eff, 1)
    b_row = b_row.reshape(rows_eff, 1)

    kernel = functools.partial(
        _s4norm_kernel, n_true=n, eps=float(eps), col_tile=tc,
        needs_col_mask=needs_col_mask)

    out = pl.pallas_call(
        kernel,
        out_shape=jax.ShapeDtypeStruct((rows_eff, n_eff), orig_dtype),
        grid_spec=pltpu.PrefetchScalarGridSpec(
            num_scalar_prefetch=0,
            grid=(n_row_blocks, 2, n_col_blocks),
            in_specs=[
                pl.BlockSpec((rt, tc), lambda r, p, c: (r, c)),
                pl.BlockSpec((rt, 1), lambda r, p, c: (r, 0)),
                pl.BlockSpec((rt, 1), lambda r, p, c: (r, 0)),
            ],
            # Phase 0 pins the output block at (r, 0); it is only flushed to
            # HBM after phase 1 writes real data (single HBM write per block).
            out_specs=pl.BlockSpec((rt, tc), lambda r, p, c: (r, c * p)),
            scratch_shapes=[
                pltpu.VMEM((rt, 1), jnp.float32),   # sum(x-K)     -> scale
                pltpu.VMEM((rt, 1), jnp.float32),   # sum((x-K)^2) -> shift
                pltpu.VMEM((rt, 1), jnp.float32),   # per-row shift K
            ],
        ),
        compiler_params=pltpu.CompilerParams(
            dimension_semantics=("parallel", "arbitrary", "arbitrary"),
            vmem_limit_bytes=vmem_limit,
        ),
    )(x2, w_row, b_row)

    if rows_eff != rows or n_eff != n:
        out = out[:rows, :n]
    return out.reshape(orig_shape)


def _reference(x, weight, bias, eps):
    C = x.shape[1]
    mean = jnp.mean(x, axis=(-1, -2, -3, -4), keepdims=True)
    std = jnp.std(x, axis=(-1, -2, -3, -4), keepdims=True, ddof=1)
    shape = (1, C, 1, 1, 1, 1)
    return weight.reshape(shape) * (x - mean) / (std + eps) + bias.reshape(shape)


if __name__ == "__main__":
    eps = 1e-8
    key = jax.random.PRNGKey(0)

    configs = [
        # shape,              max_block_cols, dtype,         tol
        ((2, 4, 4, 8, 8, 8),  None, jnp.float32,  1e-4),  # aligned, single-pass fast path
        ((2, 5, 3, 6, 6, 6),  None, jnp.float32,  1e-4),  # ragged rows + ragged last col block
        ((2, 4, 4, 8, 8, 8),  512,  jnp.float32,  1e-4),  # forced multi-column reduction
        ((2, 5, 3, 6, 6, 6),  256,  jnp.float32,  1e-4),  # multi-column + ragged tail mask
        ((2, 4, 4, 8, 8, 8),  None, jnp.bfloat16, 5e-2),  # dtype-preserving (bf16) path
    ]
    for shape, mbc, dtype, tol in configs:
        key, k1, k2, k3 = jax.random.split(key, 4)
        C = shape[1]
        x = jax.random.normal(k1, shape, jnp.float32)
        # Shift the mean away from zero to exercise the shifted-moment path.
        x = (x + 3.0).astype(dtype)
        weight = 1.0 + 0.1 * jax.random.normal(k2, (C,), jnp.float32)
        bias = 0.1 * jax.random.normal(k3, (C,), jnp.float32)

        out = s4norm_forward(x, weight, bias, eps=eps, max_block_cols=mbc)
        out = jax.block_until_ready(out)
        assert out.shape == x.shape and out.dtype == x.dtype

        ref = _reference(x.astype(jnp.float32), weight, bias, eps)
        err = float(jnp.max(jnp.abs(out.astype(jnp.float32) - ref)))
        assert err < tol, f"shape={shape} dtype={dtype} max |err| = {err}"

    print("KERNEL_OK")
</pallas_src>

<mosaic_0001>
module attributes {stable_mosaic.version = 11 : i64} {
  func.func @_s4norm_kernel(%arg0: i32, %arg1: i32, %arg2: i32, %arg3: memref<8x2048xf32, #tpu.memory_space<vmem>>, %arg4: memref<8x1xf32, #tpu.memory_space<vmem>>, %arg5: memref<8x1xf32, #tpu.memory_space<vmem>>, %arg6: memref<8x2048xf32, #tpu.memory_space<vmem>>, %arg7: memref<8x1xf32, #tpu.memory_space<vmem>>, %arg8: memref<8x1xf32, #tpu.memory_space<vmem>>, %arg9: memref<8x1xf32, #tpu.memory_space<vmem>>) attributes {dimension_semantics = [#tpu.dimension_semantics<parallel>, #tpu.dimension_semantics<arbitrary>, #tpu.dimension_semantics<arbitrary>], iteration_bounds = array<i64: 1, 2, 1>, scalar_prefetch = 0 : i64, scratch_operands = 3 : i64, tpu.core_type = #tpu.core_type<tc>, window_params = [{transform_indices = @transform_0, window_bounds = array<i64: 8, 2048>}, {transform_indices = @transform_1, window_bounds = array<i64: 8, 1>}, {transform_indices = @transform_2, window_bounds = array<i64: 8, 1>}, {transform_indices = @transform_3, window_bounds = array<i64: 8, 2048>}]} {
    %c0_i32 = arith.constant 0 : i32
    %0 = arith.cmpi eq, %arg1, %c0_i32 : i32
    %c0_i32_0 = arith.constant 0 : i32
    %1 = arith.cmpi eq, %arg2, %c0_i32_0 : i32
    %2 = arith.andi %0, %1 : i1
    %3 = arith.extui %2 : i1 to i32
    %c0_i32_1 = arith.constant 0 : i32
    %4 = arith.cmpi ne, %3, %c0_i32_1 : i32
    scf.if %4 {
      %c0 = arith.constant 0 : index
      %c0_8 = arith.constant 0 : index
      %16 = vector.load %arg3[%c0, %c0_8] : memref<8x2048xf32, #tpu.memory_space<vmem>>, vector<8x1xf32>
      %c0_9 = arith.constant 0 : index
      %c0_10 = arith.constant 0 : index
      %17 = vector.load %arg9[%c0_9, %c0_10] : memref<8x1xf32, #tpu.memory_space<vmem>>, vector<8x1xf32>
      tpu.vector_store %arg9[%c0_9, %c0_10], %16 {strides = array<i32>} : memref<8x1xf32, #tpu.memory_space<vmem>>, vector<8x1xf32>,
      %cst = arith.constant 0.000000e+00 : f32
      %18 = vector.broadcast %cst : f32 to vector<8x1xf32>
      %c0_11 = arith.constant 0 : index
      %c0_12 = arith.constant 0 : index
      %19 = vector.load %arg7[%c0_11, %c0_12] : memref<8x1xf32, #tpu.memory_space<vmem>>, vector<8x1xf32>
      tpu.vector_store %arg7[%c0_11, %c0_12], %18 {strides = array<i32>} : memref<8x1xf32, #tpu.memory_space<vmem>>, vector<8x1xf32>,
      %cst_13 = arith.constant 0.000000e+00 : f32
      %20 = vector.broadcast %cst_13 : f32 to vector<8x1xf32>
      %c0_14 = arith.constant 0 : index
      %c0_15 = arith.constant 0 : index
      %21 = vector.load %arg8[%c0_14, %c0_15] : memref<8x1xf32, #tpu.memory_space<vmem>>, vector<8x1xf32>
      tpu.vector_store %arg8[%c0_14, %c0_15], %20 {strides = array<i32>} : memref<8x1xf32, #tpu.memory_space<vmem>>, vector<8x1xf32>,
    } else {
    }
    %c0_i32_2 = arith.constant 0 : i32
    %5 = arith.cmpi eq, %arg1, %c0_i32_2 : i32
    %6 = arith.extui %5 : i1 to i32
    %c0_i32_3 = arith.constant 0 : i32
    %7 = arith.cmpi ne, %6, %c0_i32_3 : i32
    scf.if %7 {
      %c0 = arith.constant 0 : index
      %c0_8 = arith.constant 0 : index
      %16 = vector.load %arg3[%c0, %c0_8] : memref<8x2048xf32, #tpu.memory_space<vmem>>, vector<8x2048xf32>
      %c0_9 = arith.constant 0 : index
      %c0_10 = arith.constant 0 : index
      %17 = vector.load %arg9[%c0_9, %c0_10] : memref<8x1xf32, #tpu.memory_space<vmem>>, vector<8x1xf32>
      %18 = vector.broadcast %17 : vector<8x1xf32> to vector<8x2048xf32>
      %19 = arith.subf %16, %18 : vector<8x2048xf32>
      %c0_11 = arith.constant 0 : index
      %c0_12 = arith.constant 0 : index
      %20 = vector.load %arg7[%c0_11, %c0_12] : memref<8x1xf32, #tpu.memory_space<vmem>>, vector<8x1xf32>
      %cst = arith.constant dense<0.000000e+00> : vector<8xf32>
      %21 = vector.multi_reduction <add>, %19, %cst [1] : vector<8x2048xf32> to vector<8xf32>
      %22 = vector.shape_cast %21 : vector<8xf32> to vector<8x1xf32>
      %23 = arith.addf %20, %22 : vector<8x1xf32>
      %c0_13 = arith.constant 0 : index
      %c0_14 = arith.constant 0 : index
      %24 = vector.load %arg7[%c0_13, %c0_14] : memref<8x1xf32, #tpu.memory_space<vmem>>, vector<8x1xf32>
      tpu.vector_store %arg7[%c0_13, %c0_14], %23 {strides = array<i32>} : memref<8x1xf32, #tpu.memory_space<vmem>>, vector<8x1xf32>,
      %c0_15 = arith.constant 0 : index
      %c0_16 = arith.constant 0 : index
      %25 = vector.load %arg8[%c0_15, %c0_16] : memref<8x1xf32, #tpu.memory_space<vmem>>, vector<8x1xf32>
      %26 = arith.mulf %19, %19 : vector<8x2048xf32>
      %cst_17 = arith.constant dense<0.000000e+00> : vector<8xf32>
      %27 = vector.multi_reduction <add>, %26, %cst_17 [1] : vector<8x2048xf32> to vector<8xf32>
      %28 = vector.shape_cast %27 : vector<8xf32> to vector<8x1xf32>
      %29 = arith.addf %25, %28 : vector<8x1xf32>
      %c0_18 = arith.constant 0 : index
      %c0_19 = arith.constant 0 : index
      %30 = vector.load %arg8[%c0_18, %c0_19] : memref<8x1xf32, #tpu.memory_space<vmem>>, vector<8x1xf32>
      tpu.vector_store %arg8[%c0_18, %c0_19], %29 {strides = array<i32>} : memref<8x1xf32, #tpu.memory_space<vmem>>, vector<8x1xf32>,
    } else {
    }
    %c1_i32 = arith.constant 1 : i32
    %8 = arith.cmpi eq, %arg1, %c1_i32 : i32
    %c0_i32_4 = arith.constant 0 : i32
    %9 = arith.cmpi eq, %arg2, %c0_i32_4 : i32
    %10 = arith.andi %8, %9 : i1
    %11 = arith.extui %10 : i1 to i32
    %c0_i32_5 = arith.constant 0 : i32
    %12 = arith.cmpi ne, %11, %c0_i32_5 : i32
    scf.if %12 {
      %c0 = arith.constant 0 : index
      %c0_8 = arith.constant 0 : index
      %16 = vector.load %arg7[%c0, %c0_8] : memref<8x1xf32, #tpu.memory_space<vmem>>, vector<8x1xf32>
      %c0_9 = arith.constant 0 : index
      %c0_10 = arith.constant 0 : index
      %17 = vector.load %arg8[%c0_9, %c0_10] : memref<8x1xf32, #tpu.memory_space<vmem>>, vector<8x1xf32>
      %c0_11 = arith.constant 0 : index
      %c0_12 = arith.constant 0 : index
      %18 = vector.load %arg9[%c0_11, %c0_12] : memref<8x1xf32, #tpu.memory_space<vmem>>, vector<8x1xf32>
      %cst = arith.constant 4.8828125E-4 : f32
      %19 = vector.broadcast %cst : f32 to vector<8x1xf32>
      %20 = arith.mulf %16, %19 : vector<8x1xf32>
      %21 = arith.addf %18, %20 : vector<8x1xf32>
      %22 = arith.mulf %16, %16 : vector<8x1xf32>
      %cst_13 = arith.constant 4.8828125E-4 : f32
      %23 = vector.broadcast %cst_13 : f32 to vector<8x1xf32>
      %24 = arith.mulf %22, %23 : vector<8x1xf32>
      %25 = arith.subf %17, %24 : vector<8x1xf32>
      %cst_14 = arith.constant 4.88519785E-4 : f32
      %26 = vector.broadcast %cst_14 : f32 to vector<8x1xf32>
      %27 = arith.mulf %25, %26 : vector<8x1xf32>
      %cst_15 = arith.constant 0.000000e+00 : f32
      %28 = vector.broadcast %cst_15 : f32 to vector<8x1xf32>
      %29 = arith.maximumf %27, %28 : vector<8x1xf32>
      %30 = math.sqrt %29 : vector<8x1xf32>
      %c0_16 = arith.constant 0 : index
      %c0_17 = arith.constant 0 : index
      %31 = vector.load %arg4[%c0_16, %c0_17] : memref<8x1xf32, #tpu.memory_space<vmem>>, vector<8x1xf32>
      %cst_18 = arith.constant 9.99999993E-9 : f32
      %32 = vector.broadcast %cst_18 : f32 to vector<8x1xf32>
      %33 = arith.addf %30, %32 : vector<8x1xf32>
      %34 = arith.divf %31, %33 : vector<8x1xf32>
      %c0_19 = arith.constant 0 : index
      %c0_20 = arith.constant 0 : index
      %35 = vector.load %arg7[%c0_19, %c0_20] : memref<8x1xf32, #tpu.memory_space<vmem>>, vector<8x1xf32>
      tpu.vector_store %arg7[%c0_19, %c0_20], %34 {strides = array<i32>} : memref<8x1xf32, #tpu.memory_space<vmem>>, vector<8x1xf32>,
      %c0_21 = arith.constant 0 : index
      %c0_22 = arith.constant 0 : index
      %36 = vector.load %arg5[%c0_21, %c0_22] : memref<8x1xf32, #tpu.memory_space<vmem>>, vector<8x1xf32>
      %37 = arith.mulf %21, %34 : vector<8x1xf32>
      %38 = arith.subf %36, %37 : vector<8x1xf32>
      %c0_23 = arith.constant 0 : index
      %c0_24 = arith.constant 0 : index
      %39 = vector.load %arg8[%c0_23, %c0_24] : memref<8x1xf32, #tpu.memory_space<vmem>>, vector<8x1xf32>
      tpu.vector_store %arg8[%c0_23, %c0_24], %38 {strides = array<i32>} : memref<8x1xf32, #tpu.memory_space<vmem>>, vector<8x1xf32>,
    } else {
    }
    %c1_i32_6 = arith.constant 1 : i32
    %13 = arith.cmpi eq, %arg1, %c1_i32_6 : i32
    %14 = arith.extui %13 : i1 to i32
    %c0_i32_7 = arith.constant 0 : i32
    %15 = arith.cmpi ne, %14, %c0_i32_7 : i32
    scf.if %15 {
      %c0 = arith.constant 0 : index
      %c0_8 = arith.constant 0 : index
      %16 = vector.load %arg3[%c0, %c0_8] : memref<8x2048xf32, #tpu.memory_space<vmem>>, vector<8x2048xf32>
      %c0_9 = arith.constant 0 : index
      %c0_10 = arith.constant 0 : index
      %17 = vector.load %arg7[%c0_9, %c0_10] : memref<8x1xf32, #tpu.memory_space<vmem>>, vector<8x1xf32>
      %18 = vector.broadcast %17 : vector<8x1xf32> to vector<8x2048xf32>
      %19 = arith.mulf %16, %18 : vector<8x2048xf32>
      %c0_11 = arith.constant 0 : index
      %c0_12 = arith.constant 0 : index
      %20 = vector.load %arg8[%c0_11, %c0_12] : memref<8x1xf32, #tpu.memory_space<vmem>>, vector<8x1xf32>
      %21 = vector.broadcast %20 : vector<8x1xf32> to vector<8x2048xf32>
      %22 = arith.addf %19, %21 : vector<8x2048xf32>
      %c0_13 = arith.constant 0 : index
      %c0_14 = arith.constant 0 : index
      %23 = vector.load %arg6[%c0_13, %c0_14] : memref<8x2048xf32, #tpu.memory_space<vmem>>, vector<8x2048xf32>
      tpu.vector_store %arg6[%c0_13, %c0_14], %22 {strides = array<i32>} : memref<8x2048xf32, #tpu.memory_space<vmem>>, vector<8x2048xf32>,
    } else {
    }
    return
  }
  func.func @transform_0(%arg0: i32, %arg1: i32, %arg2: i32) -> (i32, i32) {
    %c0_i32 = arith.constant 0 : i32
    return %arg0, %arg2 : i32, i32
  }
  func.func @transform_1(%arg0: i32, %arg1: i32, %arg2: i32) -> (i32, i32) {
    %c0_i32 = arith.constant 0 : i32
    %c0_i32_0 = arith.constant 0 : i32
    return %arg0, %c0_i32 : i32, i32
  }
  func.func @transform_2(%arg0: i32, %arg1: i32, %arg2: i32) -> (i32, i32) {
    %c0_i32 = arith.constant 0 : i32
    %c0_i32_0 = arith.constant 0 : i32
    return %arg0, %c0_i32 : i32, i32
  }
  func.func @transform_3(%arg0: i32, %arg1: i32, %arg2: i32) -> (i32, i32) {
    %0 = arith.muli %arg2, %arg1 : i32
    %c0_i32 = arith.constant 0 : i32
    return %arg0, %0 : i32, i32
  }
}

</mosaic_0001>

<bundles_post_ra>
// kernel: tpu_custom_call.1
= control target key start
LH: loop header
LB: loop body
LE: loop exit
PB: predicated region body
PF: predicated region fallthrough
CT: control target
= control target key end

     0   :  { %8 = vsyncpa [#allocation6], 0  ;;  %s859_s0 = inlined_call_operand.hbm [shape: f32[8,2048], index: 0, kind: input, shape index: {}]   ;;  %s860_s1 = inlined_call_operand.vmem [shape: f32[8,1], index: 1, kind: input, shape index: {}]   ;;  %s861_s2 = inlined_call_operand.vmem [shape: f32[8,1], index: 2, kind: input, shape index: {}]   ;;  %s862_s3 = inlined_call_operand.hbm [shape: f32[8,2048], index: 3, kind: output, shape index: {}]  }
   0x1   :  { %9 = vsyncpa [#allocation7], 0 }
   0x2   :  { %11 = vsyncpa [#allocation7 + $0x1], 0  ;;  %s761_s12 = smov 0   ;;  %s763_s13 = smov 0  }
   0x3   :  { %s765_s14 = smov 0  }
   0x4 LB: > { %s580_s15 = sadd.s32 4294967295, %s734_s14   ;;  %s581_s16 = sadd.s32 4294967294, %s734_s14   ;;  %s734_s14 = sphi %s765_s14, %s17_s14   ;;  %s730_s13 = sphi %s763_s13, %s867_s13   ;;  %s726_s12 = sphi %s761_s12, %s866_s12  }
   0x5   : > { %s32_s17 = sadd.s32 1, %s730_s13  ;;  %p582_p0 = scmp.ge.s32.totalorder %s734_s14, 1 }
   0x6   : > { %p34_p1 = scmp.ge.s32.totalorder %s32_s17, 2  ;;  %p151_p2 = scmp.lt.s32.totalorder %s734_s14, 3 }
   0x7   : > { %p783_p3 = scmp.eq.s32.totalorder %s580_s15, 0  ;;  %s736_s20 = smov [#allocation5]  }
   0x8   : > { %s869_s17 = smov (%p34_p1, %s32_s17), 0  ;;  %p789_p4 = pnand %p582_p0, %p151_p2 }
   0x9   : > { %s169_s21 = sshll.u32 %s736_s20, 4  ;;  %s170_s21 = int_to_ptr.vmem [resolvable:$true] %s169_s21 }
   0xa   : > { %p606_p5 = pneg %p789_p4  ;;  %s665_s22 = scalar_lea.vmem %s170_s21, 2048 }
   0xb   : > { %p666_p8 = scmp.ne.s32.totalorder %s170_s21, %s665_s22  ;;  %p673_p11 = scmp.lt.s32.totalorder %s170_s21, %s170_s21 }
   0xc   : > { %p607_p6 = pnand %p783_p3, %p606_p5  ;;  %p674_p12 = scmp.lt.s32.totalorder %s665_s22, %s665_s22 }
   0xe   : > { %p656_p7 = pneg %p607_p6  ;;  %p675_p13 = por %p674_p12, %p673_p11 }
  0x10   : > { %p668_p9 = pnand %p666_p8, %p656_p7 }
  0x12   : > { %p669_p10 = pneg %p668_p9 }
  0x14   : > { %p676_p0 = pnand %p675_p13, %p669_p10 }
  0x16   : > { %679 = shalt.err (!%p676_p0)
}
  0x17   : > { %609 = dma.hbm_to_vmem [thread:$0]  (!%p607_p6), %s859_s0, 2048, %s170_s21, [#allocation6]  }
  0x18   : > { %196 = sbr.rel (%p789_p4) target bundleno = 562 (0x232), region = 32 }
  0x1d   : > { %717 = dma.done.wait (%p783_p3), [#allocation6], 2048  }
  0x1e   : > { %719 = vsyncadd (%p783_p3), [#allocation6], 4294965248  ;;  %p234_p1 = scmp.eq.s32.totalorder %s726_s12, 0 }
  0x1f   : > { %v240_v0 = vld [vmem:[#allocation5] sm:$0xff] (%p234_p1)  ;;  %vm241_vm0 = vcmask (%p234_p1), 7168   ;;  %v737_v1 = vmov (%p234_p1), 0.0  }
  0x20   : > { %239 = sbr.rel (!%p234_p1) target bundleno = 37 (0x25), region = 40  ;;  %242 = vst.msk [vmem:[#allocation4] sm:$0xff] (%p234_p1), %vm241_vm0, %v240_v0  ;;  %243 = vst.msk [vmem:[#allocation2] sm:$0xff] (%p234_p1), %vm241_vm0, %v737_v1 }
  0x21   : > { %244 = vst.msk [vmem:[#allocation3] sm:$0xff] (%p234_p1), %vm241_vm0, %v737_v1 }
  0x25 PF: > { %p589_p2 = scmp.ne.s32.totalorder %s726_s12, 0 }
  0x27   : > { %247 = sbr.rel (%p589_p2) target bundleno = 345 (0x159), region = 44 }
  0x2c   : > { %v264_v2 = vld [vmem:[#allocation4] sm:$0xff]  ;;  %v738_v3 = vmov 0   ;;  %v248_v4 = vld [vmem:[#allocation5] sm:$0xff]  ;;  %v249_v5 = vld [vmem:[#allocation5 + $0x8] sm:$0xff]  ;;  %vm305_vm1 = vcmask 7168  }
  0x2d   : > { %648 = vset.pattern.permute.xlu0 %v738_v3  ;;  %v250_v9 = vld [vmem:[#allocation5 + $0x10] sm:$0xff]  ;;  %v251_v10 = vld [vmem:[#allocation5 + $0x18] sm:$0xff]  ;;  %v252_v15 = vld [vmem:[#allocation5 + $0x20] sm:$0xff] }
  0x2e   : > { %267 = vperm.xlu0 %648, %v264_v2   ;;  %v253_v18 = vld [vmem:[#allocation5 + $0x28] sm:$0xff]  ;;  %v254_v23 = vld [vmem:[#allocation5 + $0x30] sm:$0xff]  ;;  %v255_v28 = vld [vmem:[#allocation5 + $0x38] sm:$0xff] }
  0x2f   : > { %v256_v33 = vld [vmem:[#allocation5 + $0x40] sm:$0xff]  ;;  %v257_v38 = vld [vmem:[#allocation5 + $0x48] sm:$0xff]  ;;  %v258_v43 = vld [vmem:[#allocation5 + $0x50] sm:$0xff] }
  0x30   : > { %v259_v48 = vld [vmem:[#allocation5 + $0x58] sm:$0xff]  ;;  %v260_v53 = vld [vmem:[#allocation5 + $0x60] sm:$0xff]  ;;  %v261_v58 = vld [vmem:[#allocation5 + $0x68] sm:$0xff] }
  0x31   : > { %v262_v63 = vld [vmem:[#allocation5 + $0x70] sm:$0xff] }
  0xa9   : > { %v808_v6 = vpop.permute.xlu0 %267 }
  0xaa   : > { %v270_v7 = vsub.f32 %v248_v4, %v808_v6  ;;  %v271_v8 = vsub.f32 %v249_v5, %v808_v6  ;;  %v272_v11 = vsub.f32 %v250_v9, %v808_v6  ;;  %v273_v16 = vsub.f32 %v251_v10, %v808_v6  ;;  %v263_v4 = vld [vmem:[#allocation5 + $0x78] sm:$0xff] }
  0xab   : > { %v274_v19 = vsub.f32 %v252_v15, %v808_v6  ;;  %v275_v24 = vsub.f32 %v253_v18, %v808_v6  ;;  %v276_v29 = vsub.f32 %v254_v23, %v808_v6  ;;  %v277_v34 = vsub.f32 %v255_v28, %v808_v6  ;;  %v307_v23 = vld [vmem:[#allocation3] sm:$0xff] }
  0xac   : > { %v287_v12 = vadd.f32 %v271_v8, %v270_v7  ;;  %v308_v13 = vmul.f32 %v270_v7, %v270_v7  ;;  %v309_v14 = vmul.f32 %v271_v8, %v271_v8  ;;  %v310_v21 = vmul.f32 %v272_v11, %v272_v11 }
  0xad   : > { %v311_v26 = vmul.f32 %v273_v16, %v273_v16  ;;  %v312_v31 = vmul.f32 %v274_v19, %v274_v19  ;;  %v313_v36 = vmul.f32 %v275_v24, %v275_v24  ;;  %v278_v39 = vsub.f32 %v256_v33, %v808_v6 }
  0xae   : > { %v288_v17 = vadd.f32 %v287_v12, %v272_v11  ;;  %v324_v22 = vadd.f32 %v309_v14, %v308_v13  ;;  %v314_v41 = vmul.f32 %v276_v29, %v276_v29  ;;  %v279_v44 = vsub.f32 %v257_v38, %v808_v6 }
  0xaf   : > { %v315_v46 = vmul.f32 %v277_v34, %v277_v34  ;;  %v280_v49 = vsub.f32 %v258_v43, %v808_v6  ;;  %v316_v51 = vmul.f32 %v278_v39, %v278_v39  ;;  %v281_v54 = vsub.f32 %v259_v48, %v808_v6 }
  0xb0   : > { %v289_v20 = vadd.f32 %v288_v17, %v273_v16  ;;  %v325_v27 = vadd.f32 %v324_v22, %v310_v21  ;;  %v317_v56 = vmul.f32 %v279_v44, %v279_v44  ;;  %v282_v59 = vsub.f32 %v260_v53, %v808_v6 }
  0xb1   : > { %v318_v61 = vmul.f32 %v280_v49, %v280_v49  ;;  %v283_v0 = vsub.f32 %v261_v58, %v808_v6  ;;  %v319_v2 = vmul.f32 %v281_v54, %v281_v54  ;;  %v284_v5 = vsub.f32 %v262_v63, %v808_v6 }
  0xb2   : > { %v290_v25 = vadd.f32 %v289_v20, %v274_v19  ;;  %v326_v32 = vadd.f32 %v325_v27, %v311_v26  ;;  %v320_v8 = vmul.f32 %v282_v59, %v282_v59  ;;  %v285_v10 = vsub.f32 %v263_v4, %v808_v6  ;;  %v286_v20 = vld [vmem:[#allocation2] sm:$0xff] }
  0xb3   : > { %v321_v12 = vmul.f32 %v283_v0, %v283_v0  ;;  %v322_v15 = vmul.f32 %v284_v5, %v284_v5 }
  0xb4   : > { %v291_v30 = vadd.f32 %v290_v25, %v275_v24  ;;  %v327_v37 = vadd.f32 %v326_v32, %v312_v31  ;;  %v323_v17 = vmul.f32 %v285_v10, %v285_v10 }
  0xb6   : > { %v292_v35 = vadd.f32 %v291_v30, %v276_v29  ;;  %v328_v42 = vadd.f32 %v327_v37, %v313_v36 }
  0xb8   : > { %v293_v40 = vadd.f32 %v292_v35, %v277_v34  ;;  %v329_v47 = vadd.f32 %v328_v42, %v314_v41 }
  0xba   : > { %v294_v45 = vadd.f32 %v293_v40, %v278_v39  ;;  %v330_v52 = vadd.f32 %v329_v47, %v315_v46 }
  0xbc   : > { %v295_v50 = vadd.f32 %v294_v45, %v279_v44  ;;  %v331_v57 = vadd.f32 %v330_v52, %v316_v51 }
  0xbe   : > { %v296_v55 = vadd.f32 %v295_v50, %v280_v49  ;;  %v332_v62 = vadd.f32 %v331_v57, %v317_v56 }
  0xc0   : > { %v297_v60 = vadd.f32 %v296_v55, %v281_v54  ;;  %v333_v3 = vadd.f32 %v332_v62, %v318_v61 }
  0xc2   : > { %v298_v1 = vadd.f32 %v297_v60, %v282_v59  ;;  %v334_v9 = vadd.f32 %v333_v3, %v319_v2 }
  0xc4   : > { %v299_v7 = vadd.f32 %v298_v1, %v283_v0  ;;  %v335_v13 = vadd.f32 %v334_v9, %v320_v8 }
  0xc6   : > { %v300_v11 = vadd.f32 %v299_v7, %v284_v5  ;;  %v336_v16 = vadd.f32 %v335_v13, %v321_v12 }
  0xc8   : > { %v301_v14 = vadd.f32 %v300_v11, %v285_v10  ;;  %v337_v18 = vadd.f32 %v336_v16, %v322_v15 }
  0xca   : > { %302 = vadd.xlane.f32.xlu0 %v301_v14  ;;  %v338_v19 = vadd.f32 %v337_v18, %v323_v17 }
  0xcc   : > { %339 = vadd.xlane.f32.xlu1 %v338_v19 }
 0x153   : > { %v303_v21 = vpop.xlane.xlu0 %302 }
 0x154   : > { %v304_v22 = vadd.f32 %v303_v21, %v286_v20 }
 0x155   : > { %v340_v24 = vpop.xlane.xlu1 %339 }
 0x156   : > { %306 = vst.msk [vmem:[#allocation2] sm:$0xff] %vm305_vm1, %v304_v22  ;;  %v341_v25 = vadd.f32 %v340_v24, %v307_v23 }
 0x158   : > { %342 = vst.msk [vmem:[#allocation3] sm:$0xff] %vm305_vm1, %v341_v25 }
 0x159 PF: > { %p343_p3 = scmp.eq.s32.totalorder %s726_s12, 1 }
 0x15a   : > { %v350_v39 = vld [vmem:[#allocation4] sm:$0xff] (%p343_p3)  ;;  %v365_v40 = vld [vmem:[%s860_s1] sm:$0xff] (%p343_p3)  ;;  %vm369_vm4 = vcmask (%p343_p3), 7168  }
 0x15b   : > { %347 = sbr.rel (!%p343_p3) target bundleno = 401 (0x191), region = 48  ;;  %v371_v44 = vld [vmem:[%s861_s2] sm:$0xff] (%p343_p3) }
 0x15d   : > { %v348_v6 = vld [vmem:[#allocation2] sm:$0xff] (%p343_p3) }
 0x15e   : > { %v353_v26 = vmul.f32 (%p343_p3), %v348_v6, %v348_v6  ;;  %v351_v38 = vmul.f32 (%p343_p3), 0.00048828125, %v348_v6 }
 0x15f   : > { %v349_v27 = vld [vmem:[#allocation3] sm:$0xff] (%p343_p3) }
 0x160   : > { %v354_v28 = vmul.f32 0.00048828125, %v353_v26  ;;  %v352_v41 = vadd.f32 %v351_v38, %v350_v39 }
 0x162   : > { %v355_v29 = vsub.f32 %v349_v27, %v354_v28 }
 0x164   : > { %v356_v30 = vmul.f32 0.0004885198, %v355_v29 }
 0x166   : > { %v357_v31 = vmax.f32 %v356_v30, 0.0 }
 0x168   : > { %649 = vrsqrt.f32 %v357_v31  ;;  %vm360_vm2 = vcmp.eq.f32.partialorder %v357_v31, inf  ;;  %v363_v33 = vand.u32 2147483648, %v357_v31  ;;  %vm362_vm3 = vcmp.eq.f32.partialorder %v357_v31, 0.0 }
 0x175   : > { %v650_v32 = vpop.eup %649 }
 0x176   : > { %v359_v34 = vmul.f32 %v650_v32, %v357_v31 }
 0x178   : > { %v361_v35 = vsel %vm360_vm2, %v357_v31, %v359_v34 }
 0x179   : > { %v364_v36 = vsel %vm362_vm3, %v363_v33, %v361_v35 }
 0x17a   : > { %v366_v37 = vadd.f32 1e-08, %v364_v36 }
 0x17c   : > { %651 = vrcp.f32 %v366_v37 }
 0x189   : > { %v652_v42 = vpop.eup %651 }
 0x18a   : > { %v368_v43 = vmul.f32 %v652_v42, %v365_v40 }
 0x18c   : > { %370 = vst.msk [vmem:[#allocation2] sm:$0xff] %vm369_vm4, %v368_v43  ;;  %v372_v45 = vmul.f32 %v368_v43, %v352_v41 }
 0x18e   : > { %v373_v46 = vsub.f32 %v371_v44, %v372_v45 }
 0x190   : > { %374 = vst.msk [vmem:[#allocation3] sm:$0xff] %vm369_vm4, %v373_v46 }
 0x191 PF: > { %p591_p4 = scmp.ne.s32.totalorder %s726_s12, 1 }
 0x193   : > { %377 = sbr.rel (%p591_p4) target bundleno = 549 (0x225), region = 52 }
 0x198   : > { %v394_v47 = vld [vmem:[#allocation2] sm:$0xff]  ;;  %v739_v48 = vmov 0   ;;  %v416_v49 = vld [vmem:[#allocation3] sm:$0xff]  ;;  %v378_v50 = vld [vmem:[#allocation5] sm:$0xff] }
 0x199   : > { %653 = vset.pattern.permute.xlu0 %v739_v48  ;;  %v379_v51 = vld [vmem:[#allocation5 + $0x8] sm:$0xff]  ;;  %v380_v52 = vld [vmem:[#allocation5 + $0x10] sm:$0xff]  ;;  %v381_v53 = vld [vmem:[#allocation5 + $0x18] sm:$0xff] }
 0x19a   : > { %397 = vperm.xlu0 %653, %v394_v47   ;;  %v382_v54 = vld [vmem:[#allocation5 + $0x20] sm:$0xff]  ;;  %v383_v55 = vld [vmem:[#allocation5 + $0x28] sm:$0xff]  ;;  %v384_v56 = vld [vmem:[#allocation5 + $0x30] sm:$0xff] }
 0x19b   : > { %v385_v57 = vld [vmem:[#allocation5 + $0x38] sm:$0xff]  ;;  %v386_v58 = vld [vmem:[#allocation5 + $0x40] sm:$0xff]  ;;  %v387_v59 = vld [vmem:[#allocation5 + $0x48] sm:$0xff] }
 0x19c   : > { %v388_v61 = vld [vmem:[#allocation5 + $0x50] sm:$0xff]  ;;  %v389_v62 = vld [vmem:[#allocation5 + $0x58] sm:$0xff]  ;;  %v390_v63 = vld [vmem:[#allocation5 + $0x60] sm:$0xff] }
 0x19d   : > { %v391_v0 = vld [vmem:[#allocation5 + $0x68] sm:$0xff]  ;;  %v392_v1 = vld [vmem:[#allocation5 + $0x70] sm:$0xff]  ;;  %v393_v2 = vld [vmem:[#allocation5 + $0x78] sm:$0xff] }
 0x19e   : > { %419 = vperm.xlu0 %653, %v416_v49  }
 0x215   : > { %v398_v60 = vpop.permute.xlu0 %397 }
 0x216   : > { %v400_v3 = vmul.f32 %v398_v60, %v378_v50  ;;  %v401_v4 = vmul.f32 %v398_v60, %v379_v51  ;;  %v402_v5 = vmul.f32 %v398_v60, %v380_v52  ;;  %v403_v7 = vmul.f32 %v398_v60, %v381_v53 }
 0x217   : > { %v404_v8 = vmul.f32 %v398_v60, %v382_v54  ;;  %v405_v9 = vmul.f32 %v398_v60, %v383_v55  ;;  %v406_v10 = vmul.f32 %v398_v60, %v384_v56  ;;  %v407_v11 = vmul.f32 %v398_v60, %v385_v57 }
 0x218   : > { %v408_v12 = vmul.f32 %v398_v60, %v386_v58  ;;  %v409_v13 = vmul.f32 %v398_v60, %v387_v59  ;;  %v410_v14 = vmul.f32 %v398_v60, %v388_v61  ;;  %v411_v15 = vmul.f32 %v398_v60, %v389_v62 }
 0x219   : > { %v420_v16 = vpop.permute.xlu0 %419  ;;  %v412_v17 = vmul.f32 %v398_v60, %v390_v63  ;;  %v413_v18 = vmul.f32 %v398_v60, %v391_v0  ;;  %v414_v19 = vmul.f32 %v398_v60, %v392_v1  ;;  %v415_v20 = vmul.f32 %v398_v60, %v393_v2 }
 0x21a   : > { %v422_v21 = vadd.f32 %v420_v16, %v400_v3  ;;  %v423_v22 = vadd.f32 %v420_v16, %v401_v4  ;;  %v424_v23 = vadd.f32 %v420_v16, %v402_v5  ;;  %v425_v24 = vadd.f32 %v420_v16, %v403_v7 }
 0x21b   : > { %v426_v25 = vadd.f32 %v420_v16, %v404_v8  ;;  %v427_v6 = vadd.f32 %v420_v16, %v405_v9  ;;  %v428_v26 = vadd.f32 %v420_v16, %v406_v10  ;;  %v429_v27 = vadd.f32 %v420_v16, %v407_v11 }
 0x21c   : > { %v430_v28 = vadd.f32 %v420_v16, %v408_v12  ;;  %v431_v29 = vadd.f32 %v420_v16, %v409_v13  ;;  %v432_v30 = vadd.f32 %v420_v16, %v410_v14  ;;  %v433_v31 = vadd.f32 %v420_v16, %v411_v15  ;;  %438 = vst [vmem:[#allocation8] sm:$0xff] %v422_v21 }
 0x21d   : > { %439 = vst [vmem:[#allocation8 + $0x8] sm:$0xff] %v423_v22  ;;  %440 = vst [vmem:[#allocation8 + $0x10] sm:$0xff] %v424_v23  ;;  %v434_v32 = vadd.f32 %v420_v16, %v412_v17  ;;  %v435_v33 = vadd.f32 %v420_v16, %v413_v18  ;;  %v436_v34 = vadd.f32 %v420_v16, %v414_v19 }
 0x21e   : > { %441 = vst [vmem:[#allocation8 + $0x18] sm:$0xff] %v425_v24  ;;  %v437_v35 = vadd.f32 %v420_v16, %v415_v20  ;;  %442 = vst [vmem:[#allocation8 + $0x20] sm:$0xff] %v426_v25 }
 0x21f   : > { %443 = vst [vmem:[#allocation8 + $0x28] sm:$0xff] %v427_v6  ;;  %444 = vst [vmem:[#allocation8 + $0x30] sm:$0xff] %v428_v26 }
 0x220   : > { %445 = vst [vmem:[#allocation8 + $0x38] sm:$0xff] %v429_v27  ;;  %446 = vst [vmem:[#allocation8 + $0x40] sm:$0xff] %v430_v28 }
 0x221   : > { %447 = vst [vmem:[#allocation8 + $0x48] sm:$0xff] %v431_v29  ;;  %448 = vst [vmem:[#allocation8 + $0x50] sm:$0xff] %v432_v30 }
 0x222   : > { %449 = vst [vmem:[#allocation8 + $0x58] sm:$0xff] %v433_v31  ;;  %450 = vst [vmem:[#allocation8 + $0x60] sm:$0xff] %v434_v32 }
 0x223   : > { %451 = vst [vmem:[#allocation8 + $0x68] sm:$0xff] %v435_v33  ;;  %452 = vst [vmem:[#allocation8 + $0x70] sm:$0xff] %v436_v34 }
 0x224   : > { %453 = vst [vmem:[#allocation8 + $0x78] sm:$0xff] %v437_v35 }
 0x225 PF: > { %p836_p5 = scmp.eq.s32.totalorder %s580_s15, 1  ;;  %s740_s30 = smov [#allocation8]  }
 0x226   : > { %s472_s4 = sshll.u32 %s740_s30, 4  ;;  %s473_s4 = int_to_ptr.vmem [resolvable:$true] %s472_s4 }
 0x227   : > { %s680_s5 = scalar_lea.vmem %s473_s4, 2048  ;;  %s686_s6 = scalar_lea.vmem %s473_s4, 4096 }
 0x228   : > { %p681_p6 = scmp.ne.s32.totalorder %s473_s4, %s680_s5  ;;  %p687_p9 = scmp.lt.s32.totalorder %s473_s4, %s473_s4 }
 0x229   : > { %p688_p10 = scmp.lt.s32.totalorder %s686_s6, %s680_s5 }
 0x22a   : > { %p682_p7 = pnand %p681_p6, %p836_p5 }
 0x22b   : > { %p689_p11 = por %p688_p10, %p687_p9 }
 0x22c   : > { %p683_p8 = pneg %p682_p7 }
 0x22e   : > { %p690_p12 = pnand %p689_p11, %p683_p8 }
 0x230   : > { %693 = shalt.err (!%p690_p12)
}
 0x231   : > { %603 = dma.vmem_to_hbm [thread:$0]  (%p836_p5), %s473_s4, 2048, %s862_s3, [#allocation7]  }
 0x232 PF: > { %p617_p13 = scmp.ge.s32.totalorder %s734_s14, 2  ;;  %p618_p0 = scmp.eq.s32.totalorder %s581_s16, 1 }
 0x234   : > { %p611_p1 = pnand %p618_p0, %p617_p13 }
 0x236   : > { %p612_p2 = pneg %p611_p1 }
 0x238   : > { %721 = dma.done.wait (%p612_p2), [#allocation7], 2048  }
 0x239   : > { %723 = vsyncadd (%p612_p2), [#allocation7], 4294965248  ;;  %s17_s14 = sadd.s32 1, %s734_s14   ;;  %s866_s12 = smov %s730_s13 }
 0x23a   : > { %p14_p3 = scmp.ge.s32.totalorder %s17_s14, 4   ;;  %s867_s13 = smov %s869_s17 }
 0x23c   :  { %16 = sbr.rel (!%p14_p3) target bundleno = 4 (0x4), region = 92 }
 0x241   :  { %490 = vsyncpa [#allocation6], 1 }
 0x242   :  { %492 = vsyncpa [#allocation6 + $0x1], 1 }
 0x243   :  { %493 = vsyncpa [#allocation7], 1 }
 0x244   :  { %495 = vsyncpa [#allocation7 + $0x1], 1 }

</bundles_post_ra>
